<compile_context>
chip_gen: v5e
topology: v5e:2x2
jax: 0.10.0
libtpu: 0.0.40
codegen_flags: <defaults>
</compile_context>

<pallas_src>
import jax
import jax.numpy as jnp
from jax.experimental import pallas as pl
from jax.experimental.pallas import tpu as pltpu

_ACC_ROWS = 8                 # sublane count of one vreg; accumulator row dim
_DEFAULT_LANES = 512          # lane-dense last dim (multiple of 128)
_DEFAULT_BLOCK_ROWS = 2048    # 2048 x 512 f32 = 4 MiB per block
_MIN_BLOCK_ROWS = 512         # avoid grid-step-overhead-bound tiny blocks
_SMALL_THRESHOLD = 65536      # below this, fused XLA reduction wins
_NUM_SPLITS = 2               # megacore split (v7x); harmless on 1-TC chips


def _round_up(x, m):
    return ((x + m - 1) // m) * m


def _make_kernel(rows, block_rows, lanes, blocks_per_split, need_mask):
    """Kernel: accumulate per-lane partial sums of (t1-t2)^2 into o_ref.

    o_ref is the (8, lanes) output block owned by this parallel index; it is
    revisited across the 'arbitrary' grid axis and acts as the accumulator.
    """

    def kernel(t1_ref, t2_ref, o_ref):
        j = pl.program_id(1)

        @pl.when(j == 0)
        def _init():
            o_ref[...] = jnp.zeros_like(o_ref)

        d = t1_ref[...].astype(jnp.float32) - t2_ref[...].astype(jnp.float32)
        sq = d * d

        if need_mask:
            # Mask rows beyond the true row count (partial last block and/or
            # clamped over-provisioned blocks).  Select, never multiply, so
            # garbage (inf/nan) in the OOB region cannot propagate.
            c = pl.program_id(0)
            base = (c * blocks_per_split + j) * block_rows
            row_ids = base + jax.lax.broadcasted_iota(
                jnp.int32, (block_rows, lanes), 0)
            sq = jnp.where(row_ids < rows, sq, jnp.float32(0.0))

        # Fold block rows into the (8, lanes) accumulator: pure VPU adds,
        # no cross-lane work in steady state.
        o_ref[...] += sq.reshape(
            block_rows // _ACC_ROWS, _ACC_ROWS, lanes).sum(axis=0)

    return kernel


def _partial_sums_pallas(x1, x2, rows, lanes, block_rows):
    """Returns (num_splits*8, lanes) f32 per-lane partial sums of (x1-x2)^2."""
    grid_len = pl.cdiv(rows, block_rows)
    num_splits = _NUM_SPLITS if grid_len >= 2 else 1
    blocks_per_split = pl.cdiv(grid_len, num_splits)
    covered_rows = num_splits * blocks_per_split * block_rows
    need_mask = covered_rows != rows
    need_clamp = num_splits * blocks_per_split > grid_len
    last_block = grid_len - 1

    def in_index_map(c, j):
        lb = c * blocks_per_split + j
        if need_clamp:
            lb = jnp.minimum(lb, last_block)   # keep DMA in bounds; masked in-kernel
        return (lb, 0)

    kernel = _make_kernel(rows, block_rows, lanes, blocks_per_split, need_mask)

    return pl.pallas_call(
        kernel,
        out_shape=jax.ShapeDtypeStruct(
            (num_splits * _ACC_ROWS, lanes), jnp.float32),
        grid_spec=pltpu.PrefetchScalarGridSpec(
            num_scalar_prefetch=0,
            grid=(num_splits, blocks_per_split),
            in_specs=[
                pl.BlockSpec((block_rows, lanes), in_index_map),
                pl.BlockSpec((block_rows, lanes), in_index_map),
            ],
            # Each parallel index owns a distinct (8, lanes) output block that
            # stays resident across the reduction axis (accumulator pattern).
            out_specs=pl.BlockSpec((_ACC_ROWS, lanes), lambda c, j: (c, 0)),
        ),
        compiler_params=pltpu.CompilerParams(
            dimension_semantics=("parallel", "arbitrary"),
            vmem_limit_bytes=32 * 1024 * 1024,
        ),
    )(x1, x2)


def discriminability_prompt_loss(text_feature,
                                 block_rows=_DEFAULT_BLOCK_ROWS,
                                 lanes=_DEFAULT_LANES,
                                 small_threshold=_SMALL_THRESHOLD):
    """text_feature: tuple (t1, t2) of equal-shape arrays.

    Returns a scalar float32 = exp(-sum((t1 - t2)^2) / 2) matching the
    PyTorch module. Accumulation is f32; summation order differs slightly
    from PyTorch (negligible for this loss).
    """
    t1, t2 = text_feature
    assert t1.shape == t2.shape
    assert lanes % 128 == 0

    total = int(t1.size)
    f1 = t1.reshape(-1)
    f2 = t2.reshape(-1)

    chunk = _ACC_ROWS * lanes
    main = (total // chunk) * chunk   # (8*lanes)-aligned prefix handled by Pallas

    # Small-input fast path (the module's actual text-feature sizes land here).
    if total < small_threshold or main == 0:
        d = f1.astype(jnp.float32) - f2.astype(jnp.float32)
        return jnp.exp(-jnp.sum(d * d) * jnp.float32(0.5))

    # Ragged tail (< 8*lanes elems): plain jnp reduction in the wrapper.
    tail_sum = jnp.float32(0.0)
    if main < total:
        dt = f1[main:].astype(jnp.float32) - f2[main:].astype(jnp.float32)
        tail_sum = jnp.sum(dt * dt)
        f1m, f2m = f1[:main], f2[:main]
    else:
        f1m, f2m = f1, f2

    rows = main // lanes                      # multiple of 8 by construction
    br = min(_round_up(max(int(block_rows), _MIN_BLOCK_ROWS), _ACC_ROWS), rows)

    partials = _partial_sums_pallas(
        f1m.reshape(rows, lanes), f2m.reshape(rows, lanes), rows, lanes, br)

    return jnp.exp(-(jnp.sum(partials) + tail_sum) * jnp.float32(0.5))


if __name__ == "__main__":
    key = jax.random.PRNGKey(0)
    k1, k2, k3, k4, k5, k6, k7, k8 = jax.random.split(key, 8)

    # ---- 1) Module-shaped tiny text features (seq=8, hidden=32): fast path.
    seq, hidden = 8, 32
    t1 = 0.05 * jax.random.normal(k1, (seq, hidden), dtype=jnp.float32)
    t2 = 0.05 * jax.random.normal(k2, (seq, hidden), dtype=jnp.float32)
    loss1 = jax.block_until_ready(discriminability_prompt_loss((t1, t2)))
    ref1 = jnp.exp(-jnp.sum((t1 - t2) ** 2) / 2)
    assert jnp.allclose(loss1, ref1, rtol=1e-5, atol=1e-6), (loss1, ref1)

    # ---- 2) Odd-sized input: Pallas single-block path + wrapper tail fold.
    a = 0.005 * jax.random.normal(k3, (3, 500, 77), dtype=jnp.float32)
    b = 0.005 * jax.random.normal(k4, (3, 500, 77), dtype=jnp.float32)
    loss2 = jax.block_until_ready(discriminability_prompt_loss((a, b)))
    ref2 = jnp.exp(-jnp.sum((a - b) ** 2) / 2)
    assert jnp.allclose(loss2, ref2, rtol=2e-4, atol=1e-6), (loss2, ref2)

    # ---- 3) Larger odd-sized input with small blocks: multi-block grid,
    # 2-way parallel split, partial-block masking, index clamping, tail fold.
    c = 0.002 * jax.random.normal(k5, (5, 413, 321), dtype=jnp.float32)
    d = 0.002 * jax.random.normal(k6, (5, 413, 321), dtype=jnp.float32)
    loss3 = jax.block_until_ready(
        discriminability_prompt_loss((c, d), block_rows=512))
    ref3 = jnp.exp(-jnp.sum((c - d) ** 2) / 2)
    assert jnp.allclose(loss3, ref3, rtol=2e-4, atol=1e-6), (loss3, ref3)

    # ---- 4) bf16 inputs stay bf16 in HBM; kernel upcasts in VMEM.
    e = (0.005 * jax.random.normal(k7, (160, 512), dtype=jnp.float32)
         ).astype(jnp.bfloat16)
    f = (0.005 * jax.random.normal(k8, (160, 512), dtype=jnp.float32)
         ).astype(jnp.bfloat16)
    loss4 = jax.block_until_ready(discriminability_prompt_loss((e, f)))
    ref4 = jnp.exp(-jnp.sum((e.astype(jnp.float32)
                             - f.astype(jnp.float32)) ** 2) / 2)
    assert jnp.allclose(loss4, ref4, rtol=5e-4, atol=1e-6), (loss4, ref4)

    print("KERNEL_OK")
</pallas_src>

<mosaic_0001>
module attributes {stable_mosaic.version = 11 : i64} {
  func.func @kernel(%arg0: i32, %arg1: i32, %arg2: memref<224x512xf32, #tpu.memory_space<vmem>>, %arg3: memref<224x512xf32, #tpu.memory_space<vmem>>, %arg4: memref<8x512xf32, #tpu.memory_space<vmem>>) attributes {dimension_semantics = [#tpu.dimension_semantics<parallel>, #tpu.dimension_semantics<arbitrary>], iteration_bounds = array<i64: 1, 1>, scalar_prefetch = 0 : i64, scratch_operands = 0 : i64, tpu.core_type = #tpu.core_type<tc>, window_params = [{transform_indices = @transform_0, window_bounds = array<i64: 224, 512>}, {transform_indices = @transform_1, window_bounds = array<i64: 224, 512>}, {transform_indices = @transform_2, window_bounds = array<i64: 8, 512>}]} {
    %c0_i32 = arith.constant 0 : i32
    %0 = arith.cmpi eq, %arg1, %c0_i32 : i32
    %1 = arith.extui %0 : i1 to i32
    %c0_i32_0 = arith.constant 0 : i32
    %2 = arith.cmpi ne, %1, %c0_i32_0 : i32
    scf.if %2 {
      %cst_8 = arith.constant 0.000000e+00 : f32
      %12 = vector.broadcast %cst_8 : f32 to vector<8x512xf32>
      %c0_9 = arith.constant 0 : index
      %c0_10 = arith.constant 0 : index
      %13 = vector.load %arg4[%c0_9, %c0_10] : memref<8x512xf32, #tpu.memory_space<vmem>>, vector<8x512xf32>
      tpu.vector_store %arg4[%c0_9, %c0_10], %12 {strides = array<i32>} : memref<8x512xf32, #tpu.memory_space<vmem>>, vector<8x512xf32>,
    } else {
    }
    %c0 = arith.constant 0 : index
    %c0_1 = arith.constant 0 : index
    %3 = vector.load %arg2[%c0, %c0_1] : memref<224x512xf32, #tpu.memory_space<vmem>>, vector<224x512xf32>
    %c0_2 = arith.constant 0 : index
    %c0_3 = arith.constant 0 : index
    %4 = vector.load %arg3[%c0_2, %c0_3] : memref<224x512xf32, #tpu.memory_space<vmem>>, vector<224x512xf32>
    %5 = arith.subf %3, %4 : vector<224x512xf32>
    %6 = arith.mulf %5, %5 : vector<224x512xf32>
    %c0_4 = arith.constant 0 : index
    %c0_5 = arith.constant 0 : index
    %7 = vector.load %arg4[%c0_4, %c0_5] : memref<8x512xf32, #tpu.memory_space<vmem>>, vector<8x512xf32>
    %8 = vector.shape_cast %6 : vector<224x512xf32> to vector<28x8x512xf32>
    %cst = arith.constant dense<0.000000e+00> : vector<8x512xf32>
    %9 = vector.multi_reduction <add>, %8, %cst [0] : vector<28x8x512xf32> to vector<8x512xf32>
    %10 = arith.addf %7, %9 : vector<8x512xf32>
    %c0_6 = arith.constant 0 : index
    %c0_7 = arith.constant 0 : index
    %11 = vector.load %arg4[%c0_6, %c0_7] : memref<8x512xf32, #tpu.memory_space<vmem>>, vector<8x512xf32>
    tpu.vector_store %arg4[%c0_6, %c0_7], %10 {strides = array<i32>} : memref<8x512xf32, #tpu.memory_space<vmem>>, vector<8x512xf32>,
    return
  }
  func.func @transform_0(%arg0: i32, %arg1: i32) -> (i32, i32) {
    %c1_i32 = arith.constant 1 : i32
    %0 = arith.muli %arg0, %c1_i32 : i32
    %1 = arith.addi %0, %arg1 : i32
    %c0_i32 = arith.constant 0 : i32
    %c0_i32_0 = arith.constant 0 : i32
    return %1, %c0_i32 : i32, i32
  }
  func.func @transform_1(%arg0: i32, %arg1: i32) -> (i32, i32) {
    %c1_i32 = arith.constant 1 : i32
    %0 = arith.muli %arg0, %c1_i32 : i32
    %1 = arith.addi %0, %arg1 : i32
    %c0_i32 = arith.constant 0 : i32
    %c0_i32_0 = arith.constant 0 : i32
    return %1, %c0_i32 : i32, i32
  }
  func.func @transform_2(%arg0: i32, %arg1: i32) -> (i32, i32) {
    %c0_i32 = arith.constant 0 : i32
    %c0_i32_0 = arith.constant 0 : i32
    return %arg0, %c0_i32 : i32, i32
  }
}

</mosaic_0001>

<bundles_post_ra>
// kernel: tpu_custom_call.1
= control target key start
LH: loop header
LB: loop body
LE: loop exit
PB: predicated region body
PF: predicated region fallthrough
CT: control target
= control target key end

     0   :  { %7 = vsyncpa [#allocation3], 0  ;;  %s769_s0 = inlined_call_operand.hbm [shape: f32[224,512], index: 0, kind: input, shape index: {}]   ;;  %s770_s1 = inlined_call_operand.hbm [shape: f32[224,512], index: 1, kind: input, shape index: {}]   ;;  %s771_s2 = inlined_call_operand.hbm [shape: f32[8,512], index: 2, kind: output, shape index: {}]  }
   0x1   :  { %8 = vsyncpa [#allocation6], 0 }
   0x2   :  { %9 = vsyncpa [#allocation4], 0  ;;  %s19_s11 = sshll.u32 %s769_s0, 4  ;;  %s736_s12 = smov [#allocation2]   ;;  %s20_s11 = int_to_ptr.hbm [resolvable:$true] %s19_s11 }
   0x3   :  { %s21_s13 = sshll.u32 %s736_s12, 4  ;;  %s37_s16 = sshll.u32 %s770_s1, 4  ;;  %s22_s13 = int_to_ptr.vmem [resolvable:$true] %s21_s13  ;;  %s38_s16 = int_to_ptr.hbm [resolvable:$true] %s37_s16 }
   0x4   :  { %s737_s17 = smov 512   ;;  %s738_s18 = smov 32  }
   0x5   :  { %27 = dma.hbm_to_vmem [thread:$0]  %s20_s11, 14336, %s22_s13, [#allocation3], %s737_s17, %s737_s17, %s738_s18  }
   0x6   :  { %s739_s19 = smov [#allocation5]  }
   0x7   :  { %s39_s20 = sshll.u32 %s739_s19, 4  ;;  %s40_s20 = int_to_ptr.vmem [resolvable:$true] %s39_s20 }
   0x8   :  { %45 = dma.hbm_to_vmem [thread:$0]  %s38_s16, 14336, %s40_s20, [#allocation6], %s737_s17, %s737_s17, %s738_s18  }
   0x9   :  { %730 = dma.done.wait [#allocation3], 14336  }
   0xa   :  { %731 = vsyncadd [#allocation3], 4294952960 }
   0xb   :  { %732 = dma.done.wait [#allocation6], 14336  }
   0xc   :  { %733 = vsyncadd [#allocation6], 4294952960  ;;  %v66_v0 = vld [vmem:[#allocation2] sm:$0xff]  ;;  %v67_v37 = vld [vmem:[#allocation2 + $0x8] sm:$0xff]  ;;  %s740_s0 = smov [#allocation7]   ;;  %s641_s23 = sshll.u32 %s771_s2, 4  ;;  %s642_s23 = int_to_ptr.hbm [resolvable:$true] %s641_s23 }
   0xd   :  { %v70_v1 = vld [vmem:[#allocation2 + $0x20] sm:$0xff]  ;;  %v71_v38 = vld [vmem:[#allocation2 + $0x28] sm:$0xff]  ;;  %s639_s1 = sshll.u32 %s740_s0, 4  ;;  %s640_s1 = int_to_ptr.vmem [resolvable:$true] %s639_s1 }
   0xe   :  { %v178_v2 = vld [vmem:[#allocation5] sm:$0xff]  ;;  %v179_v39 = vld [vmem:[#allocation5 + $0x8] sm:$0xff] }
   0xf   :  { %v182_v3 = vld [vmem:[#allocation5 + $0x20] sm:$0xff]  ;;  %v290_v6 = vsub.f32 %v66_v0, %v178_v2  ;;  %v183_v40 = vld [vmem:[#allocation5 + $0x28] sm:$0xff]  ;;  %v291_v53 = vsub.f32 %v67_v37, %v179_v39 }
  0x10   :  { %v74_v4 = vld [vmem:[#allocation2 + $0x40] sm:$0xff]  ;;  %v294_v7 = vsub.f32 %v70_v1, %v182_v3  ;;  %v75_v47 = vld [vmem:[#allocation2 + $0x48] sm:$0xff]  ;;  %v295_v54 = vsub.f32 %v71_v38, %v183_v40 }
  0x11   :  { %v186_v5 = vld [vmem:[#allocation5 + $0x40] sm:$0xff]  ;;  %v402_v14 = vmul.f32 %v290_v6, %v290_v6  ;;  %v187_v48 = vld [vmem:[#allocation5 + $0x48] sm:$0xff] }
  0x12   :  { %v78_v8 = vld [vmem:[#allocation2 + $0x60] sm:$0xff]  ;;  %v298_v10 = vsub.f32 %v74_v4, %v186_v5  ;;  %v406_v15 = vmul.f32 %v294_v7, %v294_v7  ;;  %v79_v55 = vld [vmem:[#allocation2 + $0x68] sm:$0xff]  ;;  %v299_v62 = vsub.f32 %v75_v47, %v187_v48  ;;  %v403_v7 = vmul.f32 %v291_v53, %v291_v53 }
  0x13   :  { %v190_v9 = vld [vmem:[#allocation5 + $0x60] sm:$0xff]  ;;  %v191_v56 = vld [vmem:[#allocation5 + $0x68] sm:$0xff] }
  0x14   :  { %v82_v11 = vld [vmem:[#allocation2 + $0x80] sm:$0xff]  ;;  %v302_v13 = vsub.f32 %v78_v8, %v190_v9  ;;  %v410_v19 = vmul.f32 %v298_v10, %v298_v10  ;;  %v518_v24 = vadd.f32 %v406_v15, %v402_v14  ;;  %v83_v1 = vld [vmem:[#allocation2 + $0x88] sm:$0xff]  ;;  %v303_v6 = vsub.f32 %v79_v55, %v191_v56 }
  0x15   :  { %v194_v12 = vld [vmem:[#allocation5 + $0x80] sm:$0xff]  ;;  %v195_v2 = vld [vmem:[#allocation5 + $0x88] sm:$0xff]  ;;  %v407_v8 = vmul.f32 %v295_v54, %v295_v54 }
  0x16   :  { %v86_v16 = vld [vmem:[#allocation2 + $0xa0] sm:$0xff]  ;;  %v306_v18 = vsub.f32 %v82_v11, %v194_v12  ;;  %v414_v23 = vmul.f32 %v302_v13, %v302_v13  ;;  %v519_v29 = vadd.f32 %v518_v24, %v410_v19  ;;  %v87_v10 = vld [vmem:[#allocation2 + $0xa8] sm:$0xff] }
  0x17   :  { %v198_v17 = vld [vmem:[#allocation5 + $0xa0] sm:$0xff]  ;;  %v199_v11 = vld [vmem:[#allocation5 + $0xa8] sm:$0xff] }
  0x18   :  { %v90_v20 = vld [vmem:[#allocation2 + $0xc0] sm:$0xff]  ;;  %v310_v22 = vsub.f32 %v86_v16, %v198_v17  ;;  %v418_v28 = vmul.f32 %v306_v18, %v306_v18  ;;  %v520_v36 = vadd.f32 %v519_v29, %v414_v23  ;;  %v307_v16 = vsub.f32 %v83_v1, %v195_v2  ;;  %v103_v53 = vld [vmem:[#allocation2 + $0x128] sm:$0xff] }
  0x19   :  { %v202_v21 = vld [vmem:[#allocation5 + $0xc0] sm:$0xff]  ;;  %v411_v17 = vmul.f32 %v299_v62, %v299_v62  ;;  %v215_v54 = vld [vmem:[#allocation5 + $0x128] sm:$0xff] }
  0x1a   :  { %v94_v25 = vld [vmem:[#allocation2 + $0xe0] sm:$0xff]  ;;  %v314_v27 = vsub.f32 %v90_v20, %v202_v21  ;;  %v422_v35 = vmul.f32 %v310_v22, %v310_v22  ;;  %v521_v44 = vadd.f32 %v520_v36, %v418_v28  ;;  %v91_v20 = vld [vmem:[#allocation2 + $0xc8] sm:$0xff]  ;;  %v419_v36 = vmul.f32 %v307_v16, %v307_v16 }
  0x1b   :  { %v206_v26 = vld [vmem:[#allocation5 + $0xe0] sm:$0xff]  ;;  %v203_v21 = vld [vmem:[#allocation5 + $0xc8] sm:$0xff] }
  0x1c   :  { %v98_v30 = vld [vmem:[#allocation2 + $0x100] sm:$0xff]  ;;  %v318_v34 = vsub.f32 %v94_v25, %v206_v26  ;;  %v426_v43 = vmul.f32 %v314_v27, %v314_v27  ;;  %v522_v52 = vadd.f32 %v521_v44, %v422_v35  ;;  %v311_v25 = vsub.f32 %v87_v10, %v199_v11 }
  0x1d   :  { %v210_v31 = vld [vmem:[#allocation5 + $0x100] sm:$0xff]  ;;  %v415_v26 = vmul.f32 %v303_v6, %v303_v6  ;;  %v545_v27 = vadd.f32 %v407_v8, %v403_v7  ;;  %v315_v35 = vsub.f32 %v91_v20, %v203_v21  ;;  %v327_v8 = vsub.f32 %v103_v53, %v215_v54 }
  0x1e   :  { %v102_v32 = vld [vmem:[#allocation2 + $0x120] sm:$0xff]  ;;  %v322_v42 = vsub.f32 %v98_v30, %v210_v31  ;;  %v430_v51 = vmul.f32 %v318_v34, %v318_v34  ;;  %v523_v61 = vadd.f32 %v522_v52, %v426_v43  ;;  %v95_v30 = vld [vmem:[#allocation2 + $0xe8] sm:$0xff]  ;;  %v423_v48 = vmul.f32 %v311_v25, %v311_v25 }
  0x1f   :  { %v214_v33 = vld [vmem:[#allocation5 + $0x120] sm:$0xff]  ;;  %v207_v31 = vld [vmem:[#allocation5 + $0xe8] sm:$0xff]  ;;  %v546_v37 = vadd.f32 %v545_v27, %v411_v17 }
  0x20   :  { %v106_v41 = vld [vmem:[#allocation2 + $0x140] sm:$0xff]  ;;  %v326_v46 = vsub.f32 %v102_v32, %v214_v33  ;;  %v434_v60 = vmul.f32 %v322_v42, %v322_v42  ;;  %v524_v5 = vadd.f32 %v523_v61, %v430_v51  ;;  %v211_v42 = vld [vmem:[#allocation5 + $0x108] sm:$0xff]  ;;  %v319_v47 = vsub.f32 %v95_v30, %v207_v31  ;;  %v72_v31 = vld [vmem:[#allocation2 + $0x30] sm:$0xff] }
  0x21   :  { %v218_v45 = vld [vmem:[#allocation5 + $0x140] sm:$0xff] }
  0x22   :  { %v110_v49 = vld [vmem:[#allocation2 + $0x160] sm:$0xff]  ;;  %v330_v59 = vsub.f32 %v106_v41, %v218_v45  ;;  %v438_v0 = vmul.f32 %v326_v46, %v326_v46  ;;  %v525_v15 = vadd.f32 %v524_v5, %v434_v60  ;;  %v99_v41 = vld [vmem:[#allocation2 + $0x108] sm:$0xff]  ;;  %v427_v60 = vmul.f32 %v315_v35, %v315_v35 }
  0x23   :  { %v222_v50 = vld [vmem:[#allocation5 + $0x160] sm:$0xff] }
  0x24   :  { %v114_v57 = vld [vmem:[#allocation2 + $0x180] sm:$0xff]  ;;  %v334_v63 = vsub.f32 %v110_v49, %v222_v50  ;;  %v442_v14 = vmul.f32 %v330_v59, %v330_v59  ;;  %v526_v24 = vadd.f32 %v525_v15, %v438_v0  ;;  %v547_v49 = vadd.f32 %v546_v37, %v415_v26  ;;  %v223_v15 = vld [vmem:[#allocation5 + $0x168] sm:$0xff]  ;;  %v68_v26 = vld [vmem:[#allocation2 + $0x10] sm:$0xff] }
  0x25   :  { %v226_v58 = vld [vmem:[#allocation5 + $0x180] sm:$0xff]  ;;  %v323_v59 = vsub.f32 %v99_v41, %v211_v42 }
  0x26   :  { %v118_v3 = vld [vmem:[#allocation2 + $0x1a0] sm:$0xff]  ;;  %v338_v9 = vsub.f32 %v114_v57, %v226_v58  ;;  %v446_v19 = vmul.f32 %v334_v63, %v334_v63  ;;  %v527_v34 = vadd.f32 %v526_v24, %v442_v14  ;;  %v107_v57 = vld [vmem:[#allocation2 + $0x148] sm:$0xff]  ;;  %v548_v61 = vadd.f32 %v547_v49, %v419_v36 }
  0x27   :  { %v230_v4 = vld [vmem:[#allocation5 + $0x1a0] sm:$0xff]  ;;  %v219_v58 = vld [vmem:[#allocation5 + $0x148] sm:$0xff]  ;;  %v435_v24 = vmul.f32 %v323_v59, %v323_v59 }
  0x28   :  { %v122_v12 = vld [vmem:[#allocation2 + $0x1c0] sm:$0xff]  ;;  %v342_v18 = vsub.f32 %v118_v3, %v230_v4  ;;  %v450_v29 = vmul.f32 %v338_v9, %v338_v9  ;;  %v528_v46 = vadd.f32 %v527_v34, %v446_v19  ;;  %v431_v9 = vmul.f32 %v319_v47, %v319_v47  ;;  %v111_v14 = vld [vmem:[#allocation2 + $0x168] sm:$0xff] }
  0x29   :  { %v234_v13 = vld [vmem:[#allocation5 + $0x1c0] sm:$0xff]  ;;  %v549_v10 = vadd.f32 %v548_v61, %v423_v48  ;;  %v331_v16 = vsub.f32 %v107_v57, %v219_v58  ;;  %v235_v49 = vld [vmem:[#allocation5 + $0x1c8] sm:$0xff] }
  0x2a   :  { %v126_v22 = vld [vmem:[#allocation2 + $0x1e0] sm:$0xff]  ;;  %v346_v28 = vsub.f32 %v122_v12, %v234_v13  ;;  %v454_v40 = vmul.f32 %v342_v18, %v342_v18  ;;  %v529_v56 = vadd.f32 %v528_v46, %v450_v29 }
  0x2b   :  { %v238_v23 = vld [vmem:[#allocation5 + $0x1e0] sm:$0xff]  ;;  %v550_v25 = vadd.f32 %v549_v10, %v427_v60  ;;  %v443_v47 = vmul.f32 %v331_v16, %v331_v16 }
  0x2c   :  { %v130_v32 = vld [vmem:[#allocation2 + $0x200] sm:$0xff]  ;;  %v350_v39 = vsub.f32 %v126_v22, %v238_v23  ;;  %v458_v52 = vmul.f32 %v346_v28, %v346_v28  ;;  %v530_v7 = vadd.f32 %v529_v56, %v454_v40  ;;  %v115_v22 = vld [vmem:[#allocation2 + $0x188] sm:$0xff] }
  0x2d   :  { %v242_v33 = vld [vmem:[#allocation5 + $0x200] sm:$0xff]  ;;  %v227_v23 = vld [vmem:[#allocation5 + $0x188] sm:$0xff]  ;;  %v551_v40 = vadd.f32 %v550_v25, %v431_v9  ;;  %v88_v25 = vld [vmem:[#allocation2 + $0xb0] sm:$0xff] }
  0x2e   :  { %v134_v38 = vld [vmem:[#allocation2 + $0x220] sm:$0xff]  ;;  %v354_v51 = vsub.f32 %v130_v32, %v242_v33  ;;  %v462_v2 = vmul.f32 %v350_v39, %v350_v39  ;;  %v531_v21 = vadd.f32 %v530_v7, %v458_v52  ;;  %v180_v32 = vld [vmem:[#allocation5 + $0x10] sm:$0xff]  ;;  %v439_v39 = vmul.f32 %v327_v8, %v327_v8 }
  0x2f   :  { %v138_v43 = vld [vmem:[#allocation2 + $0x240] sm:$0xff]  ;;  %v184_v33 = vld [vmem:[#allocation5 + $0x30] sm:$0xff]  ;;  %v339_v46 = vsub.f32 %v115_v22, %v227_v23  ;;  %v292_v53 = vsub.f32 %v68_v26, %v180_v32 }
  0x30   :  { %v142_v44 = vld [vmem:[#allocation2 + $0x260] sm:$0xff]  ;;  %v466_v20 = vmul.f32 %v354_v51, %v354_v51  ;;  %v532_v37 = vadd.f32 %v531_v21, %v462_v2  ;;  %v76_v51 = vld [vmem:[#allocation2 + $0x50] sm:$0xff]  ;;  %v296_v54 = vsub.f32 %v72_v31, %v184_v33  ;;  %v247_v31 = vld [vmem:[#allocation5 + $0x228] sm:$0xff] }
  0x31   :  { %v246_v45 = vld [vmem:[#allocation5 + $0x220] sm:$0xff]  ;;  %v188_v52 = vld [vmem:[#allocation5 + $0x50] sm:$0xff]  ;;  %v451_v8 = vmul.f32 %v339_v46, %v339_v46 }
  0x32   :  { %v250_v50 = vld [vmem:[#allocation5 + $0x240] sm:$0xff]  ;;  %v358_v1 = vsub.f32 %v134_v38, %v246_v45  ;;  %v335_v38 = vsub.f32 %v111_v14, %v223_v15  ;;  %v231_v45 = vld [vmem:[#allocation5 + $0x1a8] sm:$0xff]  ;;  %v533_v48 = vadd.f32 %v532_v37, %v466_v20  ;;  %v192_v2 = vld [vmem:[#allocation5 + $0x70] sm:$0xff]  ;;  %v300_v9 = vsub.f32 %v76_v51, %v188_v52 }
  0x33   :  { %v254_v55 = vld [vmem:[#allocation5 + $0x260] sm:$0xff]  ;;  %v362_v12 = vsub.f32 %v138_v43, %v250_v50  ;;  %v119_v43 = vld [vmem:[#allocation2 + $0x1a8] sm:$0xff]  ;;  %v552_v50 = vadd.f32 %v551_v40, %v435_v24  ;;  %v84_v14 = vld [vmem:[#allocation2 + $0x90] sm:$0xff]  ;;  %v408_v16 = vmul.f32 %v296_v54, %v296_v54 }
  0x34   :  { %v146_v62 = vld [vmem:[#allocation2 + $0x280] sm:$0xff]  ;;  %v366_v13 = vsub.f32 %v142_v44, %v254_v55  ;;  %v470_v30 = vmul.f32 %v358_v1, %v358_v1  ;;  %v123_v44 = vld [vmem:[#allocation2 + $0x1c8] sm:$0xff]  ;;  %v80_v1 = vld [vmem:[#allocation2 + $0x70] sm:$0xff] }
  0x35   :  { %v150_v63 = vld [vmem:[#allocation2 + $0x2a0] sm:$0xff]  ;;  %v474_v42 = vmul.f32 %v362_v12, %v362_v12  ;;  %v347_v7 = vsub.f32 %v123_v44, %v235_v49  ;;  %v196_v15 = vld [vmem:[#allocation5 + $0x90] sm:$0xff]  ;;  %v304_v20 = vsub.f32 %v80_v1, %v192_v2  ;;  %v251_v44 = vld [vmem:[#allocation5 + $0x248] sm:$0xff] }
  0x36   :  { %v154_v0 = vld [vmem:[#allocation2 + $0x2c0] sm:$0xff]  ;;  %v478_v59 = vmul.f32 %v366_v13, %v366_v13  ;;  %v534_v61 = vadd.f32 %v533_v48, %v470_v30  ;;  %v404_v13 = vmul.f32 %v292_v53, %v292_v53  ;;  %v200_v26 = vld [vmem:[#allocation5 + $0xb0] sm:$0xff]  ;;  %v135_v30 = vld [vmem:[#allocation2 + $0x228] sm:$0xff]  ;;  %v308_v33 = vsub.f32 %v84_v14, %v196_v15 }
  0x37   :  { %v158_v3 = vld [vmem:[#allocation2 + $0x2e0] sm:$0xff]  ;;  %v416_v46 = vmul.f32 %v304_v20, %v304_v20  ;;  %v359_v48 = vsub.f32 %v135_v30, %v247_v31  ;;  %v96_v51 = vld [vmem:[#allocation2 + $0xf0] sm:$0xff]  ;;  %v147_v54 = vld [vmem:[#allocation2 + $0x288] sm:$0xff] }
  0x38   :  { %v258_v4 = vld [vmem:[#allocation5 + $0x280] sm:$0xff]  ;;  %v535_v10 = vadd.f32 %v534_v61, %v474_v42  ;;  %v139_v42 = vld [vmem:[#allocation2 + $0x248] sm:$0xff]  ;;  %v208_v52 = vld [vmem:[#allocation5 + $0xf0] sm:$0xff]  ;;  %v420_v61 = vmul.f32 %v308_v33, %v308_v33 }
  0x39   :  { %v262_v5 = vld [vmem:[#allocation5 + $0x2a0] sm:$0xff]  ;;  %v370_v27 = vsub.f32 %v146_v62, %v258_v4  ;;  %v343_v62 = vsub.f32 %v119_v43, %v231_v45  ;;  %v127_v4 = vld [vmem:[#allocation2 + $0x1e8] sm:$0xff]  ;;  %v312_v45 = vsub.f32 %v88_v25, %v200_v26  ;;  %v100_v2 = vld [vmem:[#allocation2 + $0x110] sm:$0xff] }
  0x3a   :  { %v266_v6 = vld [vmem:[#allocation5 + $0x2c0] sm:$0xff]  ;;  %v374_v28 = vsub.f32 %v150_v63, %v262_v5  ;;  %v447_v63 = vmul.f32 %v335_v38, %v335_v38  ;;  %v131_v5 = vld [vmem:[#allocation2 + $0x208] sm:$0xff]  ;;  %v536_v21 = vadd.f32 %v535_v10, %v478_v59  ;;  %v92_v38 = vld [vmem:[#allocation2 + $0xd0] sm:$0xff] }
  0x3b   :  { %v270_v11 = vld [vmem:[#allocation5 + $0x2e0] sm:$0xff]  ;;  %v378_v29 = vsub.f32 %v154_v0, %v266_v6  ;;  %v553_v0 = vadd.f32 %v552_v50, %v439_v39  ;;  %v239_v6 = vld [vmem:[#allocation5 + $0x1e8] sm:$0xff]  ;;  %v455_v23 = vmul.f32 %v343_v62, %v343_v62  ;;  %v204_v39 = vld [vmem:[#allocation5 + $0xd0] sm:$0xff] }
  0x3c   :  { %v162_v17 = vld [vmem:[#allocation2 + $0x300] sm:$0xff]  ;;  %v382_v41 = vsub.f32 %v158_v3, %v270_v11  ;;  %v482_v3 = vmul.f32 %v370_v27, %v370_v27  ;;  %v243_v11 = vld [vmem:[#allocation5 + $0x208] sm:$0xff]  ;;  %v351_v22 = vsub.f32 %v127_v4, %v239_v6  ;;  %v104_v14 = vld [vmem:[#allocation2 + $0x130] sm:$0xff] }
  0x3d   :  { %v166_v18 = vld [vmem:[#allocation2 + $0x320] sm:$0xff]  ;;  %v554_v12 = vadd.f32 %v553_v0, %v443_v47  ;;  %v355_v32 = vsub.f32 %v131_v5, %v243_v11  ;;  %v143_v43 = vld [vmem:[#allocation2 + $0x268] sm:$0xff]  ;;  %v471_v11 = vmul.f32 %v359_v48, %v359_v48  ;;  %v216_v15 = vld [vmem:[#allocation5 + $0x130] sm:$0xff] }
  0x3e   :  { %v170_v19 = vld [vmem:[#allocation2 + $0x340] sm:$0xff]  ;;  %v494_v27 = vmul.f32 %v382_v41, %v382_v41  ;;  %v255_v41 = vld [vmem:[#allocation5 + $0x268] sm:$0xff]  ;;  %v463_v49 = vmul.f32 %v351_v22, %v351_v22  ;;  %v108_v26 = vld [vmem:[#allocation2 + $0x150] sm:$0xff]  ;;  %v328_v33 = vsub.f32 %v104_v14, %v216_v15 }
  0x3f   :  { %v274_v34 = vld [vmem:[#allocation5 + $0x300] sm:$0xff]  ;;  %v555_v24 = vadd.f32 %v554_v12, %v447_v63  ;;  %v259_v59 = vld [vmem:[#allocation5 + $0x288] sm:$0xff]  ;;  %v363_v63 = vsub.f32 %v139_v42, %v251_v44  ;;  %v467_v0 = vmul.f32 %v355_v32, %v355_v32  ;;  %v367_v6 = vsub.f32 %v143_v43, %v255_v41  ;;  %v220_v30 = vld [vmem:[#allocation5 + $0x150] sm:$0xff] }
  0x40   :  { %v278_v35 = vld [vmem:[#allocation5 + $0x320] sm:$0xff]  ;;  %v386_v56 = vsub.f32 %v162_v17, %v274_v34  ;;  %v412_v34 = vmul.f32 %v300_v9, %v300_v9  ;;  %v263_v62 = vld [vmem:[#allocation5 + $0x2a8] sm:$0xff]  ;;  %v371_v10 = vsub.f32 %v147_v54, %v259_v59  ;;  %v112_v32 = vld [vmem:[#allocation2 + $0x170] sm:$0xff]  ;;  %v332_v44 = vsub.f32 %v108_v26, %v220_v30 }
  0x41   :  { %v282_v36 = vld [vmem:[#allocation5 + $0x340] sm:$0xff]  ;;  %v390_v57 = vsub.f32 %v166_v18, %v278_v35  ;;  %v486_v18 = vmul.f32 %v374_v28, %v374_v28  ;;  %v537_v35 = vadd.f32 %v536_v21, %v482_v3  ;;  %v556_v37 = vadd.f32 %v555_v24, %v451_v8  ;;  %v212_v3 = vld [vmem:[#allocation5 + $0x110] sm:$0xff]  ;;  %v155_v4 = vld [vmem:[#allocation2 + $0x2c8] sm:$0xff] }
  0x42   :  { %v174_v55 = vld [vmem:[#allocation2 + $0x360] sm:$0xff]  ;;  %v394_v58 = vsub.f32 %v170_v19, %v282_v36  ;;  %v490_v19 = vmul.f32 %v378_v29, %v378_v29  ;;  %v459_v36 = vmul.f32 %v347_v7, %v347_v7  ;;  %v572_v28 = vadd.f32 %v408_v16, %v404_v13  ;;  %v267_v5 = vld [vmem:[#allocation5 + $0x2c8] sm:$0xff]  ;;  %v224_v42 = vld [vmem:[#allocation5 + $0x170] sm:$0xff] }
  0x43   :  { %v286_v60 = vld [vmem:[#allocation5 + $0x360] sm:$0xff]  ;;  %v498_v29 = vmul.f32 %v386_v56, %v386_v56  ;;  %v502_v40 = vmul.f32 %v390_v57, %v390_v57  ;;  %v538_v47 = vadd.f32 %v537_v35, %v486_v18  ;;  %v557_v50 = vadd.f32 %v556_v37, %v455_v23  ;;  %v159_v13 = vld [vmem:[#allocation2 + $0x2e8] sm:$0xff]  ;;  %v181_v41 = vld [vmem:[#allocation5 + $0x18] sm:$0xff] }
  0x44   :  { %v762_v17 = vsub.f32 %v174_v55, %v286_v60  ;;  %v506_v53 = vmul.f32 %v394_v58, %v394_v58  ;;  %v151_v55 = vld [vmem:[#allocation2 + $0x2a8] sm:$0xff]  ;;  %v316_v60 = vsub.f32 %v92_v38, %v204_v39  ;;  %v573_v56 = vadd.f32 %v572_v28, %v412_v34  ;;  %v185_v48 = vld [vmem:[#allocation5 + $0x38] sm:$0xff]  ;;  %v116_v54 = vld [vmem:[#allocation2 + $0x190] sm:$0xff] }
  0x45   :  { %v539_v57 = vadd.f32 %v538_v47, %v490_v19  ;;  %v558_v1 = vadd.f32 %v557_v50, %v459_v36  ;;  %v320_v7 = vsub.f32 %v96_v51, %v208_v52  ;;  %v424_v8 = vmul.f32 %v312_v45, %v312_v45  ;;  %v271_v16 = vld [vmem:[#allocation5 + $0x2e8] sm:$0xff]  ;;  %v73_v47 = vld [vmem:[#allocation2 + $0x38] sm:$0xff]  ;;  %v124_v14 = vld [vmem:[#allocation2 + $0x1d0] sm:$0xff] }
  0x46   :  { %v574_v9 = vadd.f32 %v573_v56, %v416_v46  ;;  %v375_v18 = vsub.f32 %v151_v55, %v263_v62  ;;  %v324_v19 = vsub.f32 %v100_v2, %v212_v3  ;;  %v428_v20 = vmul.f32 %v316_v60, %v316_v60  ;;  %v163_v31 = vld [vmem:[#allocation2 + $0x308] sm:$0xff]  ;;  %v189_v62 = vld [vmem:[#allocation5 + $0x58] sm:$0xff]  ;;  %v232_v2 = vld [vmem:[#allocation5 + $0x1b0] sm:$0xff] }
  0x47   :  { %v540_v58 = vadd.f32 %v539_v57, %v494_v27  ;;  %v559_v12 = vadd.f32 %v558_v1, %v463_v49  ;;  %v379_v23 = vsub.f32 %v155_v4, %v267_v5  ;;  %v475_v24 = vmul.f32 %v363_v63, %v363_v63  ;;  %v275_v37 = vld [vmem:[#allocation5 + $0x308] sm:$0xff]  ;;  %v77_v57 = vld [vmem:[#allocation2 + $0x58] sm:$0xff]  ;;  %v120_v1 = vld [vmem:[#allocation2 + $0x1b0] sm:$0xff] }
  0x48   :  { %v575_v21 = vadd.f32 %v574_v9, %v420_v61  ;;  %v510_v27 = vmul.f32 %v762_v17, %v762_v17  ;;  %v432_v34 = vmul.f32 %v320_v7, %v320_v7  ;;  %v383_v38 = vsub.f32 %v159_v13, %v271_v16  ;;  %v167_v49 = vld [vmem:[#allocation2 + $0x328] sm:$0xff]  ;;  %v81_v9 = vld [vmem:[#allocation2 + $0x78] sm:$0xff]  ;;  %v236_v15 = vld [vmem:[#allocation5 + $0x1d0] sm:$0xff] }
  0x49   :  { %v541_v22 = vadd.f32 %v540_v58, %v498_v29  ;;  %v560_v25 = vadd.f32 %v559_v12, %v467_v0  ;;  %v479_v39 = vmul.f32 %v367_v6, %v367_v6  ;;  %v69_v29 = vld [vmem:[#allocation2 + $0x18] sm:$0xff]  ;;  %v483_v43 = vmul.f32 %v371_v10, %v371_v10  ;;  %v279_v55 = vld [vmem:[#allocation5 + $0x328] sm:$0xff]  ;;  %v128_v26 = vld [vmem:[#allocation2 + $0x1f0] sm:$0xff] }
  0x4a   :  { %v576_v35 = vadd.f32 %v575_v21, %v424_v8  ;;  %v436_v45 = vmul.f32 %v324_v19, %v324_v19  ;;  %v487_v50 = vmul.f32 %v375_v18, %v375_v18  ;;  %v491_v51 = vmul.f32 %v379_v23, %v379_v23  ;;  %v193_v58 = vld [vmem:[#allocation5 + $0x78] sm:$0xff]  ;;  %v283_v10 = vld [vmem:[#allocation5 + $0x348] sm:$0xff]  ;;  %v240_v30 = vld [vmem:[#allocation5 + $0x1f0] sm:$0xff] }
  0x4b   :  { %v542_v36 = vadd.f32 %v541_v22, %v502_v40  ;;  %v561_v28 = vadd.f32 %v560_v25, %v471_v11  ;;  %v228_v40 = vld [vmem:[#allocation5 + $0x190] sm:$0xff]  ;;  %v387_v59 = vsub.f32 %v163_v31, %v275_v37  ;;  %v336_v60 = vsub.f32 %v112_v32, %v224_v42  ;;  %v175_v16 = vld [vmem:[#allocation2 + $0x368] sm:$0xff]  ;;  %v85_v22 = vld [vmem:[#allocation2 + $0x98] sm:$0xff] }
  0x4c   :  { %v577_v46 = vadd.f32 %v576_v35, %v428_v20  ;;  %v440_v61 = vmul.f32 %v328_v33, %v328_v33  ;;  %v293_v3 = vsub.f32 %v69_v29, %v181_v41  ;;  %v297_v4 = vsub.f32 %v73_v47, %v185_v48  ;;  %v197_v23 = vld [vmem:[#allocation5 + $0x98] sm:$0xff]  ;;  %v132_v42 = vld [vmem:[#allocation2 + $0x210] sm:$0xff] }
  0x4d   :  { %v543_v17 = vadd.f32 %v542_v36, %v506_v53  ;;  %v562_v52 = vadd.f32 %v561_v28, %v475_v24  ;;  %v171_v53 = vld [vmem:[#allocation2 + $0x348] sm:$0xff]  ;;  %v495_v5 = vmul.f32 %v383_v38, %v383_v38  ;;  %v340_v6 = vsub.f32 %v116_v54, %v228_v40  ;;  %v89_v37 = vld [vmem:[#allocation2 + $0xb8] sm:$0xff]  ;;  %v244_v29 = vld [vmem:[#allocation5 + $0x210] sm:$0xff] }
  0x4e   :  { %v578_v56 = vadd.f32 %v577_v46, %v432_v34  ;;  %v444_v7 = vmul.f32 %v332_v44, %v332_v44  ;;  %v391_v11 = vsub.f32 %v167_v49, %v279_v55  ;;  %v301_v13 = vsub.f32 %v77_v57, %v189_v62  ;;  %v287_v24 = vld [vmem:[#allocation5 + $0x368] sm:$0xff]  ;;  %v201_v38 = vld [vmem:[#allocation5 + $0xb8] sm:$0xff] }
  0x4f   :  { %v544_v63 = vadd.f32 %v543_v17, %v510_v27  ;;  %v563_v0 = vadd.f32 %v562_v52, %v479_v39  ;;  %v499_v18 = vmul.f32 %v387_v59, %v387_v59  ;;  %v344_v19 = vsub.f32 %v120_v1, %v232_v2  ;;  %v93_v48 = vld [vmem:[#allocation2 + $0xd8] sm:$0xff]  ;;  %v248_v52 = vld [vmem:[#allocation5 + $0x230] sm:$0xff] }
  0x50   :  { %v579_v8 = vadd.f32 %v578_v56, %v436_v45  ;;  %v448_v20 = vmul.f32 %v336_v60, %v336_v60  ;;  %v305_v27 = vsub.f32 %v81_v9, %v193_v58  ;;  %v405_v31 = vmul.f32 %v293_v3, %v293_v3  ;;  %v205_v17 = vld [vmem:[#allocation5 + $0xd8] sm:$0xff]  ;;  %v144_v58 = vld [vmem:[#allocation2 + $0x270] sm:$0xff] }
  0x51   :  { %v564_v12 = vadd.f32 %v563_v0, %v483_v43  ;;  %630 = vst [vmem:[#allocation7] sm:$0xff] %v544_v63  ;;  %v409_v32 = vmul.f32 %v297_v4, %v297_v4  ;;  %v395_v33 = vsub.f32 %v171_v53, %v283_v10  ;;  %v348_v34 = vsub.f32 %v124_v14, %v236_v15  ;;  %v97_v56 = vld [vmem:[#allocation2 + $0xf8] sm:$0xff]  ;;  %v140_v63 = vld [vmem:[#allocation2 + $0x250] sm:$0xff] }
  0x52   :  { %v580_v21 = vadd.f32 %v579_v8, %v440_v61  ;;  %v452_v35 = vmul.f32 %v340_v6, %v340_v6  ;;  %v503_v39 = vmul.f32 %v391_v11, %v391_v11  ;;  %v309_v43 = vsub.f32 %v85_v22, %v197_v23  ;;  %v209_v57 = vld [vmem:[#allocation5 + $0xf8] sm:$0xff]  ;;  %v252_v0 = vld [vmem:[#allocation5 + $0x250] sm:$0xff] }
  0x53   :  { %v565_v25 = vadd.f32 %v564_v12, %v487_v50  ;;  %v413_v44 = vmul.f32 %v301_v13, %v301_v13  ;;  %v399_v45 = vsub.f32 %v175_v16, %v287_v24  ;;  %v352_v46 = vsub.f32 %v128_v26, %v240_v30  ;;  %v136_v50 = vld [vmem:[#allocation2 + $0x230] sm:$0xff]  ;;  %v213_v8 = vld [vmem:[#allocation5 + $0x118] sm:$0xff] }
  0x54   :  { %v581_v36 = vadd.f32 %v580_v21, %v444_v7  ;;  %v456_v47 = vmul.f32 %v344_v19, %v344_v19  ;;  %v313_v54 = vsub.f32 %v89_v37, %v201_v38  ;;  %v417_v40 = vmul.f32 %v305_v27, %v305_v27  ;;  %v101_v7 = vld [vmem:[#allocation2 + $0x118] sm:$0xff]  ;;  %v256_v10 = vld [vmem:[#allocation5 + $0x270] sm:$0xff] }
  0x55   :  { %v566_v28 = vadd.f32 %v565_v25, %v491_v51  ;;  %v599_v55 = vadd.f32 %v409_v32, %v405_v31  ;;  %v507_v59 = vmul.f32 %v395_v33, %v395_v33  ;;  %v356_v60 = vsub.f32 %v132_v42, %v244_v29  ;;  %v217_v19 = vld [vmem:[#allocation5 + $0x138] sm:$0xff]  ;;  %v148_v21 = vld [vmem:[#allocation2 + $0x290] sm:$0xff] }
  0x56   :  { %v582_v41 = vadd.f32 %v581_v36, %v448_v20  ;;  %v460_v61 = vmul.f32 %v348_v34, %v348_v34  ;;  %v317_v1 = vsub.f32 %v93_v48, %v205_v17  ;;  %v421_v2 = vmul.f32 %v309_v43, %v309_v43  ;;  %v260_v22 = vld [vmem:[#allocation5 + $0x290] sm:$0xff]  ;;  %v109_v31 = vld [vmem:[#allocation2 + $0x158] sm:$0xff] }
  0x57   :  { %v567_v49 = vadd.f32 %v566_v28, %v495_v5  ;;  %v600_v3 = vadd.f32 %v599_v55, %v413_v44  ;;  %v511_v4 = vmul.f32 %v399_v45, %v399_v45  ;;  %v360_v53 = vsub.f32 %v136_v50, %v248_v52  ;;  %v221_v32 = vld [vmem:[#allocation5 + $0x158] sm:$0xff]  ;;  %v152_v34 = vld [vmem:[#allocation2 + $0x2b0] sm:$0xff] }
  0x58   :  { %v583_v51 = vadd.f32 %v582_v41, %v452_v35  ;;  %v464_v5 = vmul.f32 %v352_v46, %v352_v46  ;;  %v321_v11 = vsub.f32 %v97_v56, %v209_v57  ;;  %v425_v12 = vmul.f32 %v313_v54, %v313_v54  ;;  %v264_v35 = vld [vmem:[#allocation5 + $0x2b0] sm:$0xff]  ;;  %v113_v29 = vld [vmem:[#allocation2 + $0x178] sm:$0xff] }
  0x59   :  { %v568_v62 = vadd.f32 %v567_v49, %v499_v18  ;;  %v601_v14 = vadd.f32 %v600_v3, %v417_v40  ;;  %v364_v15 = vsub.f32 %v140_v63, %v252_v0  ;;  %v468_v13 = vmul.f32 %v356_v60, %v356_v60  ;;  %v105_v18 = vld [vmem:[#allocation2 + $0x138] sm:$0xff]  ;;  %v156_v44 = vld [vmem:[#allocation2 + $0x2d0] sm:$0xff] }
  0x5a   :  { %v584_v6 = vadd.f32 %v583_v51, %v456_v47  ;;  %v325_v23 = vsub.f32 %v101_v7, %v213_v8  ;;  %v429_v24 = vmul.f32 %v317_v1, %v317_v1  ;;  %v368_v26 = vsub.f32 %v144_v58, %v256_v10  ;;  %v225_v43 = vld [vmem:[#allocation5 + $0x178] sm:$0xff]  ;;  %v268_v45 = vld [vmem:[#allocation5 + $0x2d0] sm:$0xff] }
  0x5b   :  { %v569_v9 = vadd.f32 %v568_v62, %v503_v39  ;;  %v602_v25 = vadd.f32 %v601_v14, %v421_v2  ;;  %v472_v30 = vmul.f32 %v360_v53, %v360_v53  ;;  %v329_v36 = vsub.f32 %v105_v18, %v217_v19  ;;  %v117_v50 = vld [vmem:[#allocation2 + $0x198] sm:$0xff]  ;;  %v160_v54 = vld [vmem:[#allocation2 + $0x2f0] sm:$0xff] }
  0x5c   :  { %v585_v16 = vadd.f32 %v584_v6, %v460_v61  ;;  %v433_v37 = vmul.f32 %v321_v11, %v321_v11  ;;  %v372_v39 = vsub.f32 %v148_v21, %v260_v22  ;;  %v476_v28 = vmul.f32 %v364_v15, %v364_v15  ;;  %v229_v52 = vld [vmem:[#allocation5 + $0x198] sm:$0xff]  ;;  %v272_v40 = vld [vmem:[#allocation5 + $0x2f0] sm:$0xff] }
  0x5d   :  { %v570_v20 = vadd.f32 %v569_v9, %v507_v59  ;;  %v603_v38 = vadd.f32 %v602_v25, %v425_v12  ;;  %v333_v46 = vsub.f32 %v109_v31, %v221_v32  ;;  %v437_v47 = vmul.f32 %v325_v23, %v325_v23  ;;  %v121_v57 = vld [vmem:[#allocation2 + $0x1b8] sm:$0xff]  ;;  %v164_v63 = vld [vmem:[#allocation2 + $0x310] sm:$0xff] }
  0x5e   :  { %v586_v27 = vadd.f32 %v585_v16, %v464_v5  ;;  %v376_v48 = vsub.f32 %v152_v34, %v264_v35  ;;  %v480_v17 = vmul.f32 %v368_v26, %v368_v26  ;;  %v337_v55 = vsub.f32 %v113_v29, %v225_v43  ;;  %v233_v62 = vld [vmem:[#allocation5 + $0x1b8] sm:$0xff]  ;;  %v276_v0 = vld [vmem:[#allocation5 + $0x310] sm:$0xff] }
  0x5f   :  { %v571_v33 = vadd.f32 %v570_v20, %v511_v4  ;;  %v604_v41 = vadd.f32 %v603_v38, %v429_v24  ;;  %v441_v59 = vmul.f32 %v329_v36, %v329_v36  ;;  %v380_v61 = vsub.f32 %v156_v44, %v268_v45  ;;  %v125_v6 = vld [vmem:[#allocation2 + $0x1d8] sm:$0xff]  ;;  %v168_v8 = vld [vmem:[#allocation2 + $0x330] sm:$0xff] }
  0x60   :  { %v587_v42 = vadd.f32 %v586_v27, %v468_v13  ;;  %v484_v51 = vmul.f32 %v372_v39, %v372_v39  ;;  %v341_v1 = vsub.f32 %v117_v50, %v229_v52  ;;  %v445_v2 = vmul.f32 %v333_v46, %v333_v46  ;;  %v237_v7 = vld [vmem:[#allocation5 + $0x1d8] sm:$0xff]  ;;  %v280_v9 = vld [vmem:[#allocation5 + $0x330] sm:$0xff] }
  0x61   :  { %631 = vst [vmem:[#allocation7 + $0x8] sm:$0xff] %v571_v33  ;;  %v605_v60 = vadd.f32 %v604_v41, %v433_v37  ;;  %v384_v4 = vsub.f32 %v160_v54, %v272_v40  ;;  %v488_v53 = vmul.f32 %v376_v48, %v376_v48  ;;  %v345_v58 = vsub.f32 %v121_v57, %v233_v62  ;;  %v129_v13 = vld [vmem:[#allocation2 + $0x1f8] sm:$0xff]  ;;  %v172_v18 = vld [vmem:[#allocation2 + $0x350] sm:$0xff] }
  0x62   :  { %v588_v49 = vadd.f32 %v587_v42, %v472_v30  ;;  %v449_v10 = vmul.f32 %v337_v55, %v337_v55  ;;  %v388_v12 = vsub.f32 %v164_v63, %v276_v0  ;;  %v492_v14 = vmul.f32 %v380_v61, %v380_v61  ;;  %v241_v16 = vld [vmem:[#allocation5 + $0x1f8] sm:$0xff]  ;;  %v284_v19 = vld [vmem:[#allocation5 + $0x350] sm:$0xff] }
  0x63   :  { %v606_v3 = vadd.f32 %v605_v60, %v437_v47  ;;  %v349_v20 = vsub.f32 %v125_v6, %v237_v7  ;;  %v453_v21 = vmul.f32 %v341_v1, %v341_v1  ;;  %v392_v23 = vsub.f32 %v168_v8, %v280_v9  ;;  %v133_v26 = vld [vmem:[#allocation2 + $0x218] sm:$0xff]  ;;  %v176_v27 = vld [vmem:[#allocation2 + $0x370] sm:$0xff] }
  0x64   :  { %v589_v56 = vadd.f32 %v588_v49, %v476_v28  ;;  %v496_v24 = vmul.f32 %v384_v4, %v384_v4  ;;  %v245_v30 = vld [vmem:[#allocation5 + $0x218] sm:$0xff]  ;;  %v288_v31 = vld [vmem:[#allocation5 + $0x370] sm:$0xff]  ;;  %v353_v32 = vsub.f32 %v129_v13, %v241_v16  ;;  %v457_v33 = vmul.f32 %v345_v58, %v345_v58 }
  0x65   :  { %v607_v11 = vadd.f32 %v606_v3, %v441_v59  ;;  %v396_v35 = vsub.f32 %v172_v18, %v284_v19  ;;  %v500_v36 = vmul.f32 %v388_v12, %v388_v12  ;;  %v137_v38 = vld [vmem:[#allocation2 + $0x238] sm:$0xff]  ;;  %v357_v28 = vsub.f32 %v133_v26, %v245_v30 }
  0x66   :  { %v590_v5 = vadd.f32 %v589_v56, %v480_v17  ;;  %v249_v39 = vld [vmem:[#allocation5 + $0x238] sm:$0xff]  ;;  %v461_v42 = vmul.f32 %v349_v20, %v349_v20  ;;  %v400_v43 = vsub.f32 %v176_v27, %v288_v31  ;;  %v504_v44 = vmul.f32 %v392_v23, %v392_v23 }
  0x67   :  { %v608_v22 = vadd.f32 %v607_v11, %v445_v2  ;;  %v141_v46 = vld [vmem:[#allocation2 + $0x258] sm:$0xff]  ;;  %v361_v41 = vsub.f32 %v137_v38, %v249_v39  ;;  %v465_v48 = vmul.f32 %v353_v32, %v353_v32  ;;  %v508_v49 = vmul.f32 %v396_v35, %v396_v35 }
  0x68   :  { %v591_v15 = vadd.f32 %v590_v5, %v484_v51  ;;  %v253_v47 = vld [vmem:[#allocation5 + $0x258] sm:$0xff]  ;;  %v469_v55 = vmul.f32 %v357_v28, %v357_v28  ;;  %v512_v60 = vmul.f32 %v400_v43, %v400_v43 }
  0x69   :  { %v609_v34 = vadd.f32 %v608_v22, %v449_v10  ;;  %v145_v52 = vld [vmem:[#allocation2 + $0x278] sm:$0xff]  ;;  %v365_v40 = vsub.f32 %v141_v46, %v253_v47  ;;  %v473_v62 = vmul.f32 %v361_v41, %v361_v41 }
  0x6a   :  { %v592_v25 = vadd.f32 %v591_v15, %v488_v53  ;;  %v257_v54 = vld [vmem:[#allocation5 + $0x278] sm:$0xff] }
  0x6b   :  { %v610_v29 = vadd.f32 %v609_v34, %v453_v21  ;;  %v149_v51 = vld [vmem:[#allocation2 + $0x298] sm:$0xff]  ;;  %v369_v57 = vsub.f32 %v145_v52, %v257_v54  ;;  %v477_v4 = vmul.f32 %v365_v40, %v365_v40 }
  0x6c   :  { %v593_v37 = vadd.f32 %v592_v25, %v492_v14  ;;  %v261_v56 = vld [vmem:[#allocation5 + $0x298] sm:$0xff] }
  0x6d   :  { %v611_v17 = vadd.f32 %v610_v29, %v457_v33  ;;  %v153_v1 = vld [vmem:[#allocation2 + $0x2b8] sm:$0xff]  ;;  %v373_v3 = vsub.f32 %v149_v51, %v261_v56  ;;  %v481_v9 = vmul.f32 %v369_v57, %v369_v57 }
  0x6e   :  { %v594_v45 = vadd.f32 %v593_v37, %v496_v24  ;;  %v265_v2 = vld [vmem:[#allocation5 + $0x2b8] sm:$0xff] }
  0x6f   :  { %v612_v59 = vadd.f32 %v611_v17, %v461_v42  ;;  %v157_v6 = vld [vmem:[#allocation2 + $0x2d8] sm:$0xff]  ;;  %v377_v8 = vsub.f32 %v153_v1, %v265_v2  ;;  %v485_v14 = vmul.f32 %v373_v3, %v373_v3 }
  0x70   :  { %v595_v50 = vadd.f32 %v594_v45, %v500_v36  ;;  %v269_v7 = vld [vmem:[#allocation5 + $0x2d8] sm:$0xff] }
  0x71   :  { %v613_v63 = vadd.f32 %v612_v59, %v465_v48  ;;  %v161_v10 = vld [vmem:[#allocation2 + $0x2f8] sm:$0xff]  ;;  %v381_v12 = vsub.f32 %v157_v6, %v269_v7  ;;  %v489_v19 = vmul.f32 %v377_v8, %v377_v8 }
  0x72   :  { %v596_v61 = vadd.f32 %v595_v50, %v504_v44  ;;  %v273_v11 = vld [vmem:[#allocation5 + $0x2f8] sm:$0xff] }
  0x73   :  { %v614_v53 = vadd.f32 %v613_v63, %v469_v55  ;;  %v165_v13 = vld [vmem:[#allocation2 + $0x318] sm:$0xff]  ;;  %v385_v18 = vsub.f32 %v161_v10, %v273_v11  ;;  %v493_v24 = vmul.f32 %v381_v12, %v381_v12 }
  0x74   :  { %v597_v0 = vadd.f32 %v596_v61, %v508_v49  ;;  %v277_v16 = vld [vmem:[#allocation5 + $0x318] sm:$0xff] }
  0x75   :  { %v615_v58 = vadd.f32 %v614_v53, %v473_v62  ;;  %v169_v21 = vld [vmem:[#allocation2 + $0x338] sm:$0xff]  ;;  %v389_v23 = vsub.f32 %v165_v13, %v277_v16  ;;  %v497_v31 = vmul.f32 %v385_v18, %v385_v18 }
  0x76   :  { %v598_v5 = vadd.f32 %v597_v0, %v512_v60  ;;  %v281_v22 = vld [vmem:[#allocation5 + $0x338] sm:$0xff] }
  0x77   :  { %v616_v15 = vadd.f32 %v615_v58, %v477_v4  ;;  %v173_v26 = vld [vmem:[#allocation2 + $0x358] sm:$0xff]  ;;  %v393_v27 = vsub.f32 %v169_v21, %v281_v22  ;;  %v501_v36 = vmul.f32 %v389_v23, %v389_v23 }
  0x78   :  { %632 = vst [vmem:[#allocation7 + $0x10] sm:$0xff] %v598_v5  ;;  %v285_v30 = vld [vmem:[#allocation5 + $0x358] sm:$0xff] }
  0x79   :  { %v617_v20 = vadd.f32 %v616_v15, %v481_v9  ;;  %v177_v33 = vld [vmem:[#allocation2 + $0x378] sm:$0xff]  ;;  %v397_v35 = vsub.f32 %v173_v26, %v285_v30  ;;  %v505_v39 = vmul.f32 %v393_v27, %v393_v27 }
  0x7a   :  { %v289_v34 = vld [vmem:[#allocation5 + $0x378] sm:$0xff] }
  0x7b   :  { %v618_v25 = vadd.f32 %v617_v20, %v485_v14  ;;  %v401_v38 = vsub.f32 %v177_v33, %v289_v34  ;;  %v509_v42 = vmul.f32 %v397_v35, %v397_v35 }
  0x7d   :  { %v619_v32 = vadd.f32 %v618_v25, %v489_v19  ;;  %v513_v43 = vmul.f32 %v401_v38, %v401_v38 }
  0x7f   :  { %v620_v37 = vadd.f32 %v619_v32, %v493_v24 }
  0x81   :  { %v621_v28 = vadd.f32 %v620_v37, %v497_v31 }
  0x83   :  { %v622_v29 = vadd.f32 %v621_v28, %v501_v36 }
  0x85   :  { %v623_v44 = vadd.f32 %v622_v29, %v505_v39 }
  0x87   :  { %v624_v45 = vadd.f32 %v623_v44, %v509_v42 }
  0x89   :  { %v625_v46 = vadd.f32 %v624_v45, %v513_v43 }
  0x8b   :  { %633 = vst [vmem:[#allocation7 + $0x18] sm:$0xff] %v625_v46 }
  0x8c   :  { %644 = dma.vmem_to_hbm [thread:$0]  %s640_s1, 512, %s642_s23, [#allocation4]  }
  0x8d   :  { %734 = dma.done.wait [#allocation4], 512  }
  0x8e   :  { %735 = vsyncadd [#allocation4], 4294966784 }
  0x8f   :  { %649 = vsyncpa [#allocation3], 1 }
  0x90   :  { %650 = vsyncpa [#allocation6], 1 }
  0x91   :  { %651 = vsyncpa [#allocation4], 1 }

</bundles_post_ra>
